<compile_context>
chip_gen: v5e
topology: v5e:2x2
jax: 0.10.0
libtpu: 0.0.40
codegen_flags: <defaults>
</compile_context>

<pallas_src>
import jax
import jax.numpy as jnp
from jax import lax
from jax.experimental import pallas as pl
from jax.experimental.pallas import tpu as pltpu


def _make_kernel(num_relu_layers, reverse, mask_config, batch, tb, width):
    """Coupling kernel: full-width x in, full-width y out, partial log-det out."""
    x2_parity = 1 - mask_config  # lane parity of the transformed (x2) features

    def kernel(*refs):
        tile = pl.program_id(0)

        x = refs[0][...].astype(jnp.float32)  # (TB, W) full-width batch tile
        idx = 1

        # MLP trunk (Linear + ReLU, `hidden` times).  The first layer's weight
        # already has the x1 = x[:, mask_config::2] selection folded in.
        h = x
        for _ in range(num_relu_layers):
            w_ = refs[idx][...]
            b_ = refs[idx + 1][...]
            idx += 2
            h = jnp.maximum(
                jnp.dot(h, w_, preferred_element_type=jnp.float32) + b_, 0.0)

        w_head = refs[idx][...]        # (mid, 2W) merged log_s|t head, spread onto x2 lanes
        b_head = refs[idx + 1][...]    # (1, 2W)
        y_ref = refs[idx + 2]          # (TB, W)
        ld_ref = refs[idx + 3]         # (8, 128) per-tile log-det partial

        out_head = jnp.dot(h, w_head, preferred_element_type=jnp.float32) + b_head
        log_s = out_head[:, :width]    # values live on the x2 lanes, 0 elsewhere
        t = out_head[:, width:]

        lane = lax.broadcasted_iota(jnp.int32, (tb, width), 1)
        x2_lane = (lane % 2) == x2_parity

        if reverse:
            # 1 / sigmoid(z) == 1 + exp(-z)  (stable, divide-free)
            y2 = (x - t) * (1.0 + jnp.exp(-log_s))
        else:
            y2 = jax.nn.sigmoid(log_s) * x + t
        y = jnp.where(x2_lane, y2, x)
        y_ref[...] = y.astype(y_ref.dtype)

        # log|det J| contribution of this batch tile:
        #   sum over x2 lanes of log(sigmoid(log_s)) = -softplus(-log_s).
        row = lax.broadcasted_iota(jnp.int32, (tb, width), 0) + tile * tb
        valid = x2_lane & (row < batch)          # mask padded rows of last tile
        neg = -log_s
        softplus = jnp.maximum(neg, 0.0) + jnp.log(1.0 + jnp.exp(-jnp.abs(neg)))
        partial = jnp.sum(jnp.where(valid, -softplus, 0.0))

        r8 = lax.broadcasted_iota(jnp.int32, (8, 128), 0)
        c128 = lax.broadcasted_iota(jnp.int32, (8, 128), 1)
        ld_ref[...] = jnp.where((r8 == 0) & (c128 == 0), partial, 0.0)

    return kernel


class AffineCouplingPallas:
    """JAX/Pallas re-implementation of the PyTorch AffineCoupling module."""

    def __init__(self, in_out_dim, mid_dim, hidden, mask_config, key,
                 param_dtype=jnp.float32):
        assert in_out_dim % 2 == 0
        self.in_out_dim = in_out_dim
        self.mid_dim = mid_dim
        self.hidden = hidden
        self.mask_config = mask_config

        half = in_out_dim // 2
        dims = [half] + [mid_dim] * hidden + [in_out_dim]

        # nn.Linear-style init: U(+-1/sqrt(fan_in)); stored (in, out) so the
        # kernel computes h @ W.
        self.weights, self.biases = [], []
        for i in range(len(dims) - 1):
            fan_in, fan_out = dims[i], dims[i + 1]
            key, kw, kb = jax.random.split(key, 3)
            bound = 1.0 / float(fan_in) ** 0.5
            self.weights.append(
                jax.random.uniform(kw, (fan_in, fan_out), jnp.float32, -bound, bound))
            self.biases.append(
                jax.random.uniform(kb, (fan_out,), jnp.float32, -bound, bound))

        # ---- one-time parameter glue (fuses split + interleave into weights) ----
        # First layer: fold the x1 = x[:, mask_config::2] selection into W0
        # (zero rows at the x2 lane positions).
        w0 = jnp.zeros((in_out_dim, mid_dim), jnp.float32)
        w0 = w0.at[mask_config::2, :].set(self.weights[0])
        layer_ws = [w0] + list(self.weights[1:-1])
        layer_bs = [b[None, :] for b in self.biases[:-1]]

        # Last layer: split into log_s (cols 0::2) / t (cols 1::2) heads, permute
        # each head's columns onto the x2 lane positions, and merge the two heads
        # into a single (mid, 2W) matmul.
        w_last, b_last = self.weights[-1], self.biases[-1]
        x2 = 1 - mask_config
        ws_sp = jnp.zeros((mid_dim, in_out_dim), jnp.float32).at[:, x2::2].set(w_last[:, 0::2])
        wt_sp = jnp.zeros((mid_dim, in_out_dim), jnp.float32).at[:, x2::2].set(w_last[:, 1::2])
        bs_sp = jnp.zeros((in_out_dim,), jnp.float32).at[x2::2].set(b_last[0::2])
        bt_sp = jnp.zeros((in_out_dim,), jnp.float32).at[x2::2].set(b_last[1::2])
        w_head = jnp.concatenate([ws_sp, wt_sp], axis=1)    # (mid, 2W)
        b_head = jnp.concatenate([bs_sp, bt_sp])[None, :]   # (1, 2W)

        self.layer_ws = [w.astype(param_dtype) for w in layer_ws]
        self.layer_bs = [b.astype(param_dtype) for b in layer_bs]
        self.w_head = w_head.astype(param_dtype)
        self.b_head = b_head.astype(param_dtype)

    def __call__(self, x, log_det_J, reverse=False):
        b, w = x.shape
        assert w == self.in_out_dim

        # Batch tile: whole batch if it's small, otherwise 128-row tiles
        # (multiple of 8 sublanes; grid handles the remainder with masking).
        tb = b if b <= 128 else 128
        num_tiles = (b + tb - 1) // tb

        operands = [x]
        for wl, bl in zip(self.layer_ws, self.layer_bs):
            operands += [wl, bl]
        operands += [self.w_head, self.b_head]

        in_specs = [pl.BlockSpec((tb, w), lambda i: (i, 0))]
        for op in operands[1:]:
            # Weights / biases: whole-array blocks with a constant index map,
            # so they stay VMEM-resident across all batch tiles.
            in_specs.append(pl.BlockSpec(op.shape, lambda i: (0, 0)))

        kernel = _make_kernel(self.hidden, reverse, self.mask_config, b, tb, w)

        y, ld_blocks = pl.pallas_call(
            kernel,
            grid=(num_tiles,),
            out_shape=(
                jax.ShapeDtypeStruct((b, w), x.dtype),
                jax.ShapeDtypeStruct((8 * num_tiles, 128), jnp.float32),
            ),
            in_specs=in_specs,
            out_specs=(
                pl.BlockSpec((tb, w), lambda i: (i, 0)),
                pl.BlockSpec((8, 128), lambda i: (i, 0)),
            ),
            compiler_params=pltpu.CompilerParams(
                dimension_semantics=("parallel",),
                vmem_limit_bytes=32 * 1024 * 1024,
            ),
        )(*operands)

        # The reference module overwrites log_det_J with the fresh sum (even in
        # reverse mode); we keep exactly that semantics.
        return y, jnp.sum(ld_blocks)

    # Pure-JAX reference (mirrors the PyTorch module) for verification.
    def reference(self, x, log_det_J, reverse=False):
        h, w = x.shape
        x1 = x[:, self.mask_config::2]
        x2 = x[:, (1 - self.mask_config)::2]
        hdn = x1
        for i in range(self.hidden):
            hdn = jnp.maximum(hdn @ self.weights[i] + self.biases[i], 0.0)
        out = hdn @ self.weights[-1] + self.biases[-1]
        log_s, t = out[:, 0::2], out[:, 1::2]
        s = jax.nn.sigmoid(log_s)
        if reverse:
            x2 = (x2 - t) / s
        else:
            x2 = s * x2 + t
        if self.mask_config:
            x_tag = jnp.stack((x2, x1), axis=2)
        else:
            x_tag = jnp.stack((x1, x2), axis=2)
        return x_tag.reshape(h, w), jnp.sum(jnp.log(jnp.abs(s)))


if __name__ == "__main__":
    key = jax.random.PRNGKey(0)
    k_param0, k_param1, k_x = jax.random.split(key, 3)

    batch = 8
    in_out_dim = 16
    mid_dim = 32
    hidden = 3

    x = jax.random.normal(k_x, (batch, in_out_dim), jnp.float32)
    log_det_in = jnp.float32(0.0)

    for mask_config, k_param in ((0, k_param0), (1, k_param1)):
        layer = AffineCouplingPallas(in_out_dim, mid_dim, hidden, mask_config, k_param)
        for reverse in (False, True):
            y, log_det = layer(x, log_det_in, reverse=reverse)
            y = jax.block_until_ready(y)
            log_det = jax.block_until_ready(log_det)

            y_ref, ld_ref = layer.reference(x, log_det_in, reverse=reverse)
            assert y.shape == (batch, in_out_dim)
            assert jnp.allclose(y, y_ref, atol=1e-5, rtol=1e-5), (mask_config, reverse)
            assert jnp.allclose(log_det, ld_ref, atol=1e-4, rtol=1e-5), (mask_config, reverse)

    print("KERNEL_OK")
</pallas_src>

<mosaic_0001>
module attributes {stable_mosaic.version = 11 : i64} {
  func.func @kernel(%arg0: i32, %arg1: memref<8x16xf32, #tpu.memory_space<vmem>>, %arg2: memref<16x32xf32, #tpu.memory_space<vmem>>, %arg3: memref<1x32xf32, #tpu.memory_space<vmem>>, %arg4: memref<32x32xf32, #tpu.memory_space<vmem>>, %arg5: memref<1x32xf32, #tpu.memory_space<vmem>>, %arg6: memref<32x32xf32, #tpu.memory_space<vmem>>, %arg7: memref<1x32xf32, #tpu.memory_space<vmem>>, %arg8: memref<32x32xf32, #tpu.memory_space<vmem>>, %arg9: memref<1x32xf32, #tpu.memory_space<vmem>>, %arg10: memref<8x16xf32, #tpu.memory_space<vmem>>, %arg11: memref<8x128xf32, #tpu.memory_space<vmem>>) attributes {dimension_semantics = [#tpu.dimension_semantics<parallel>], iteration_bounds = array<i64: 1>, scalar_prefetch = 0 : i64, scratch_operands = 0 : i64, tpu.core_type = #tpu.core_type<tc>, window_params = [{transform_indices = @transform_0, window_bounds = array<i64: 8, 16>}, {pipeline_mode = #tpu.pipeline_mode<synchronous>, transform_indices = @transform_1, window_bounds = array<i64: 16, 32>}, {pipeline_mode = #tpu.pipeline_mode<synchronous>, transform_indices = @transform_2, window_bounds = array<i64: 1, 32>}, {pipeline_mode = #tpu.pipeline_mode<synchronous>, transform_indices = @transform_3, window_bounds = array<i64: 32, 32>}, {pipeline_mode = #tpu.pipeline_mode<synchronous>, transform_indices = @transform_4, window_bounds = array<i64: 1, 32>}, {pipeline_mode = #tpu.pipeline_mode<synchronous>, transform_indices = @transform_5, window_bounds = array<i64: 32, 32>}, {pipeline_mode = #tpu.pipeline_mode<synchronous>, transform_indices = @transform_6, window_bounds = array<i64: 1, 32>}, {pipeline_mode = #tpu.pipeline_mode<synchronous>, transform_indices = @transform_7, window_bounds = array<i64: 32, 32>}, {pipeline_mode = #tpu.pipeline_mode<synchronous>, transform_indices = @transform_8, window_bounds = array<i64: 1, 32>}, {transform_indices = @transform_9, window_bounds = array<i64: 8, 16>}, {transform_indices = @transform_10, window_bounds = array<i64: 8, 128>}]} {
    %c0 = arith.constant 0 : index
    %c0_0 = arith.constant 0 : index
    %0 = vector.load %arg1[%c0, %c0_0] : memref<8x16xf32, #tpu.memory_space<vmem>>, vector<8x16xf32>
    %c0_1 = arith.constant 0 : index
    %c0_2 = arith.constant 0 : index
    %1 = vector.load %arg2[%c0_1, %c0_2] : memref<16x32xf32, #tpu.memory_space<vmem>>, vector<16x32xf32>
    %c0_3 = arith.constant 0 : index
    %c0_4 = arith.constant 0 : index
    %2 = vector.load %arg3[%c0_3, %c0_4] : memref<1x32xf32, #tpu.memory_space<vmem>>, vector<1x32xf32>
    %cst = arith.constant dense<0.000000e+00> : vector<8x32xf32>
    %3 = tpu.matmul %0, %1, %cst {dimension_numbers = #tpu.dot_dimension_numbers<[1], [0], [0], [1], [0, 0, 1, 1], [], []>} : vector<8x16xf32>, vector<16x32xf32>, vector<8x32xf32> -> vector<8x32xf32>
    %4 = vector.broadcast %2 : vector<1x32xf32> to vector<8x32xf32>
    %5 = arith.addf %3, %4 : vector<8x32xf32>
    %cst_5 = arith.constant 0.000000e+00 : f32
    %6 = vector.broadcast %cst_5 : f32 to vector<8x32xf32>
    %7 = arith.maximumf %5, %6 : vector<8x32xf32>
    %c0_6 = arith.constant 0 : index
    %c0_7 = arith.constant 0 : index
    %8 = vector.load %arg4[%c0_6, %c0_7] : memref<32x32xf32, #tpu.memory_space<vmem>>, vector<32x32xf32>
    %c0_8 = arith.constant 0 : index
    %c0_9 = arith.constant 0 : index
    %9 = vector.load %arg5[%c0_8, %c0_9] : memref<1x32xf32, #tpu.memory_space<vmem>>, vector<1x32xf32>
    %cst_10 = arith.constant dense<0.000000e+00> : vector<8x32xf32>
    %10 = tpu.matmul %7, %8, %cst_10 {dimension_numbers = #tpu.dot_dimension_numbers<[1], [0], [0], [1], [0, 0, 1, 1], [], []>} : vector<8x32xf32>, vector<32x32xf32>, vector<8x32xf32> -> vector<8x32xf32>
    %11 = vector.broadcast %9 : vector<1x32xf32> to vector<8x32xf32>
    %12 = arith.addf %10, %11 : vector<8x32xf32>
    %cst_11 = arith.constant 0.000000e+00 : f32
    %13 = vector.broadcast %cst_11 : f32 to vector<8x32xf32>
    %14 = arith.maximumf %12, %13 : vector<8x32xf32>
    %c0_12 = arith.constant 0 : index
    %c0_13 = arith.constant 0 : index
    %15 = vector.load %arg6[%c0_12, %c0_13] : memref<32x32xf32, #tpu.memory_space<vmem>>, vector<32x32xf32>
    %c0_14 = arith.constant 0 : index
    %c0_15 = arith.constant 0 : index
    %16 = vector.load %arg7[%c0_14, %c0_15] : memref<1x32xf32, #tpu.memory_space<vmem>>, vector<1x32xf32>
    %cst_16 = arith.constant dense<0.000000e+00> : vector<8x32xf32>
    %17 = tpu.matmul %14, %15, %cst_16 {dimension_numbers = #tpu.dot_dimension_numbers<[1], [0], [0], [1], [0, 0, 1, 1], [], []>} : vector<8x32xf32>, vector<32x32xf32>, vector<8x32xf32> -> vector<8x32xf32>
    %18 = vector.broadcast %16 : vector<1x32xf32> to vector<8x32xf32>
    %19 = arith.addf %17, %18 : vector<8x32xf32>
    %cst_17 = arith.constant 0.000000e+00 : f32
    %20 = vector.broadcast %cst_17 : f32 to vector<8x32xf32>
    %21 = arith.maximumf %19, %20 : vector<8x32xf32>
    %c0_18 = arith.constant 0 : index
    %c0_19 = arith.constant 0 : index
    %22 = vector.load %arg8[%c0_18, %c0_19] : memref<32x32xf32, #tpu.memory_space<vmem>>, vector<32x32xf32>
    %c0_20 = arith.constant 0 : index
    %c0_21 = arith.constant 0 : index
    %23 = vector.load %arg9[%c0_20, %c0_21] : memref<1x32xf32, #tpu.memory_space<vmem>>, vector<1x32xf32>
    %cst_22 = arith.constant dense<0.000000e+00> : vector<8x32xf32>
    %24 = tpu.matmul %21, %22, %cst_22 {dimension_numbers = #tpu.dot_dimension_numbers<[1], [0], [0], [1], [0, 0, 1, 1], [], []>} : vector<8x32xf32>, vector<32x32xf32>, vector<8x32xf32> -> vector<8x32xf32>
    %25 = vector.broadcast %23 : vector<1x32xf32> to vector<8x32xf32>
    %26 = arith.addf %24, %25 : vector<8x32xf32>
    %27 = vector.extract_strided_slice %26 {offsets = [0, 0], sizes = [8, 16], strides = [1, 1]} : vector<8x32xf32> to vector<8x16xf32>
    %28 = vector.extract_strided_slice %26 {offsets = [0, 16], sizes = [8, 16], strides = [1, 1]} : vector<8x32xf32> to vector<8x16xf32>
    %29 = tpu.iota {dimensions = array<i32: 1>} : vector<8x16xi32>
    %c2_i32 = arith.constant 2 : i32
    %c0_i32 = arith.constant 0 : i32
    %30 = arith.cmpi eq, %c2_i32, %c0_i32 : i32
    %c1_i32 = arith.constant 1 : i32
    %31 = arith.select %30, %c1_i32, %c2_i32 : i32
    %32 = vector.broadcast %31 : i32 to vector<8x16xi32>
    %33 = arith.remsi %29, %32 : vector<8x16xi32>
    %c0_i32_23 = arith.constant 0 : i32
    %34 = vector.broadcast %c0_i32_23 : i32 to vector<8x16xi32>
    %35 = arith.cmpi ne, %33, %34 : vector<8x16xi32>
    %c0_i32_24 = arith.constant 0 : i32
    %36 = vector.broadcast %c0_i32_24 : i32 to vector<8x16xi32>
    %37 = arith.cmpi slt, %33, %36 : vector<8x16xi32>
    %c0_i32_25 = arith.constant 0 : i32
    %38 = arith.cmpi slt, %31, %c0_i32_25 : i32
    %39 = vector.broadcast %38 : i1 to vector<8x16xi1>
    %40 = vector.broadcast %39 : vector<8x16xi1> to vector<8x16xi1>
    %41 = arith.xori %37, %40 : vector<8x16xi1>
    %42 = arith.andi %41, %35 : vector<8x16xi1>
    %43 = vector.broadcast %31 : i32 to vector<8x16xi32>
    %44 = arith.addi %33, %43 : vector<8x16xi32>
    %45 = arith.select %42, %44, %33 : vector<8x16xi1>, vector<8x16xi32>
    %c1_i32_26 = arith.constant 1 : i32
    %46 = vector.broadcast %c1_i32_26 : i32 to vector<8x16xi32>
    %47 = arith.cmpi eq, %45, %46 : vector<8x16xi32>
    %48 = arith.negf %27 : vector<8x16xf32>
    %49 = math.exp %48 : vector<8x16xf32>
    %cst_27 = arith.constant 1.000000e+00 : f32
    %50 = vector.broadcast %cst_27 : f32 to vector<8x16xf32>
    %51 = arith.addf %50, %49 : vector<8x16xf32>
    %52 = arith.divf %50, %51 : vector<8x16xf32>
    %53 = arith.mulf %52, %0 : vector<8x16xf32>
    %54 = arith.addf %53, %28 : vector<8x16xf32>
    %55 = arith.select %47, %54, %0 : vector<8x16xi1>, vector<8x16xf32>
    %c0_28 = arith.constant 0 : index
    %c0_29 = arith.constant 0 : index
    %56 = vector.load %arg10[%c0_28, %c0_29] : memref<8x16xf32, #tpu.memory_space<vmem>>, vector<8x16xf32>
    tpu.vector_store %arg10[%c0_28, %c0_29], %55 {strides = array<i32>} : memref<8x16xf32, #tpu.memory_space<vmem>>, vector<8x16xf32>,
    %57 = tpu.iota {dimensions = array<i32: 0>} : vector<8x16xi32>
    %c8_i32 = arith.constant 8 : i32
    %58 = arith.muli %arg0, %c8_i32 : i32
    %59 = vector.broadcast %58 : i32 to vector<8x16xi32>
    %60 = arith.addi %57, %59 : vector<8x16xi32>
    %c8_i32_30 = arith.constant 8 : i32
    %61 = vector.broadcast %c8_i32_30 : i32 to vector<8x16xi32>
    %62 = arith.cmpi slt, %60, %61 : vector<8x16xi32>
    %63 = arith.andi %47, %62 : vector<8x16xi1>
    %cst_31 = arith.constant 0.000000e+00 : f32
    %64 = vector.broadcast %cst_31 : f32 to vector<8x16xf32>
    %65 = arith.subf %64, %27 : vector<8x16xf32>
    %cst_32 = arith.constant 0.000000e+00 : f32
    %66 = vector.broadcast %cst_32 : f32 to vector<8x16xf32>
    %67 = arith.maximumf %65, %66 : vector<8x16xf32>
    %68 = math.absf %65 : vector<8x16xf32>
    %cst_33 = arith.constant 0.000000e+00 : f32
    %69 = vector.broadcast %cst_33 : f32 to vector<8x16xf32>
    %70 = arith.subf %69, %68 : vector<8x16xf32>
    %71 = math.exp %70 : vector<8x16xf32>
    %cst_34 = arith.constant 1.000000e+00 : f32
    %72 = vector.broadcast %cst_34 : f32 to vector<8x16xf32>
    %73 = arith.addf %72, %71 : vector<8x16xf32>
    %74 = math.log %73 : vector<8x16xf32>
    %75 = arith.addf %67, %74 : vector<8x16xf32>
    %cst_35 = arith.constant 0.000000e+00 : f32
    %76 = vector.broadcast %cst_35 : f32 to vector<8x16xf32>
    %77 = arith.subf %76, %75 : vector<8x16xf32>
    %cst_36 = arith.constant 0.000000e+00 : f32
    %78 = vector.broadcast %cst_36 : f32 to vector<8x16xf32>
    %79 = arith.select %63, %77, %78 : vector<8x16xi1>, vector<8x16xf32>
    %80 = vector.shape_cast %79 : vector<8x16xf32> to vector<1x8x16xf32>
    %cst_37 = arith.constant dense<0.000000e+00> : vector<1xf32>
    %81 = vector.multi_reduction <add>, %80, %cst_37 [1, 2] : vector<1x8x16xf32> to vector<1xf32>
    %82 = vector.shape_cast %81 : vector<1xf32> to vector<1x1x1xf32>
    %83 = vector.extract %82[0, 0, 0] : f32 from vector<1x1x1xf32>
    %84 = tpu.iota {dimensions = array<i32: 0>} : vector<8x128xi32>
    %85 = tpu.iota {dimensions = array<i32: 1>} : vector<8x128xi32>
    %c0_i32_38 = arith.constant 0 : i32
    %86 = vector.broadcast %c0_i32_38 : i32 to vector<8x128xi32>
    %87 = arith.cmpi eq, %84, %86 : vector<8x128xi32>
    %c0_i32_39 = arith.constant 0 : i32
    %88 = vector.broadcast %c0_i32_39 : i32 to vector<8x128xi32>
    %89 = arith.cmpi eq, %85, %88 : vector<8x128xi32>
    %90 = arith.andi %87, %89 : vector<8x128xi1>
    %cst_40 = arith.constant 0.000000e+00 : f32
    %91 = vector.broadcast %83 : f32 to vector<8x128xf32>
    %92 = vector.broadcast %cst_40 : f32 to vector<8x128xf32>
    %93 = arith.select %90, %91, %92 : vector<8x128xi1>, vector<8x128xf32>
    %c0_41 = arith.constant 0 : index
    %c0_42 = arith.constant 0 : index
    %94 = vector.load %arg11[%c0_41, %c0_42] : memref<8x128xf32, #tpu.memory_space<vmem>>, vector<8x128xf32>
    tpu.vector_store %arg11[%c0_41, %c0_42], %93 {strides = array<i32>} : memref<8x128xf32, #tpu.memory_space<vmem>>, vector<8x128xf32>,
    return
  }
  func.func @transform_0(%arg0: i32) -> (i32, i32) {
    %c0_i32 = arith.constant 0 : i32
    %c0_i32_0 = arith.constant 0 : i32
    return %arg0, %c0_i32 : i32, i32
  }
  func.func @transform_1(%arg0: i32) -> (i32, i32) {
    %c0_i32 = arith.constant 0 : i32
    %c0_i32_0 = arith.constant 0 : i32
    %c0_i32_1 = arith.constant 0 : i32
    return %c0_i32, %c0_i32_0 : i32, i32
  }
  func.func @transform_2(%arg0: i32) -> (i32, i32) {
    %c0_i32 = arith.constant 0 : i32
    %c0_i32_0 = arith.constant 0 : i32
    %c0_i32_1 = arith.constant 0 : i32
    return %c0_i32, %c0_i32_0 : i32, i32
  }
  func.func @transform_3(%arg0: i32) -> (i32, i32) {
    %c0_i32 = arith.constant 0 : i32
    %c0_i32_0 = arith.constant 0 : i32
    %c0_i32_1 = arith.constant 0 : i32
    return %c0_i32, %c0_i32_0 : i32, i32
  }
  func.func @transform_4(%arg0: i32) -> (i32, i32) {
    %c0_i32 = arith.constant 0 : i32
    %c0_i32_0 = arith.constant 0 : i32
    %c0_i32_1 = arith.constant 0 : i32
    return %c0_i32, %c0_i32_0 : i32, i32
  }
  func.func @transform_5(%arg0: i32) -> (i32, i32) {
    %c0_i32 = arith.constant 0 : i32
    %c0_i32_0 = arith.constant 0 : i32
    %c0_i32_1 = arith.constant 0 : i32
    return %c0_i32, %c0_i32_0 : i32, i32
  }
  func.func @transform_6(%arg0: i32) -> (i32, i32) {
    %c0_i32 = arith.constant 0 : i32
    %c0_i32_0 = arith.constant 0 : i32
    %c0_i32_1 = arith.constant 0 : i32
    return %c0_i32, %c0_i32_0 : i32, i32
  }
  func.func @transform_7(%arg0: i32) -> (i32, i32) {
    %c0_i32 = arith.constant 0 : i32
    %c0_i32_0 = arith.constant 0 : i32
    %c0_i32_1 = arith.constant 0 : i32
    return %c0_i32, %c0_i32_0 : i32, i32
  }
  func.func @transform_8(%arg0: i32) -> (i32, i32) {
    %c0_i32 = arith.constant 0 : i32
    %c0_i32_0 = arith.constant 0 : i32
    %c0_i32_1 = arith.constant 0 : i32
    return %c0_i32, %c0_i32_0 : i32, i32
  }
  func.func @transform_9(%arg0: i32) -> (i32, i32) {
    %c0_i32 = arith.constant 0 : i32
    %c0_i32_0 = arith.constant 0 : i32
    return %arg0, %c0_i32 : i32, i32
  }
  func.func @transform_10(%arg0: i32) -> (i32, i32) {
    %c0_i32 = arith.constant 0 : i32
    %c0_i32_0 = arith.constant 0 : i32
    return %arg0, %c0_i32 : i32, i32
  }
}

</mosaic_0001>

<bundles_post_ra>
// kernel: tpu_custom_call.1
= control target key start
LH: loop header
LB: loop body
LE: loop exit
PB: predicated region body
PF: predicated region fallthrough
CT: control target
= control target key end

     0   :  { %16 = vsyncpa [#allocation3], 0  ;;  %s676_s0 = inlined_call_operand.hbm [shape: f32[8,16], index: 0, kind: input, shape index: {}]   ;;  %s677_s1 = inlined_call_operand.hbm [shape: f32[16,32], index: 1, kind: input, shape index: {}]   ;;  %s678_s2 = inlined_call_operand.vmem [shape: f32[1,32], index: 2, kind: input, shape index: {}]   ;;  %s679_s3 = inlined_call_operand.hbm [shape: f32[32,32], index: 3, kind: input, shape index: {}]   ;;  %s680_s4 = inlined_call_operand.vmem [shape: f32[1,32], index: 4, kind: input, shape index: {}]   ;;  %s681_s5 = inlined_call_operand.hbm [shape: f32[32,32], index: 5, kind: input, shape index: {}]   ;;  %s682_s6 = inlined_call_operand.vmem [shape: f32[1,32], index: 6, kind: input, shape index: {}]   ;;  %s683_s7 = inlined_call_operand.hbm [shape: f32[32,32], index: 7, kind: input, shape index: {}]   ;;  %s684_s8 = inlined_call_operand.vmem [shape: f32[1,32], index: 8, kind: input, shape index: {}]   ;;  %s685_s9 = inlined_call_operand.hbm [shape: f32[8,16], index: 9, kind: output, shape index: {0}]   ;;  %s686_s10 = inlined_call_operand.hbm [shape: f32[8,128], index: 10, kind: output, shape index: {1}]  }
   0x1   :  { %17 = vsyncpa [#allocation6], 0 }
   0x2   :  { %18 = vsyncpa [#allocation9], 0 }
   0x3   :  { %19 = vsyncpa [#allocation4], 0  ;;  %s36_s15 = sshll.u32 %s677_s1, 4  ;;  %s37_s15 = int_to_ptr.hbm [resolvable:$true] %s36_s15 }
   0x4   :  { %20 = vsyncpa [#allocation13], 0  ;;  %s559_s16 = smov [#allocation5]   ;;  %s66_s20 = sshll.u32 %s681_s5, 4  ;;  %s67_s20 = int_to_ptr.hbm [resolvable:$true] %s66_s20 }
   0x5   :  { %s38_s17 = sshll.u32 %s559_s16, 4  ;;  %s560_s21 = smov 128   ;;  %s39_s17 = int_to_ptr.vmem [resolvable:$true] %s38_s17 }
   0x6   :  { %s561_s22 = smov 8   ;;  %s562_s23 = smov [#allocation8]  }
   0x7   :  { %44 = dma.hbm_to_vmem [thread:$0]  %s37_s15, 256, %s39_s17, [#allocation6], %s560_s21, %s560_s21, %s561_s22  }
   0x8   :  { %s68_s24 = sshll.u32 %s562_s23, 4  ;;  %s26_s27 = sshll.u32 %s676_s0, 4  ;;  %s69_s24 = int_to_ptr.vmem [resolvable:$true] %s68_s24  ;;  %s27_s27 = int_to_ptr.hbm [resolvable:$true] %s26_s27 }
   0x9   :  { %74 = dma.hbm_to_vmem [thread:$0]  %s67_s20, 512, %s69_s24, [#allocation9], %s560_s21, %s560_s21, %s561_s22  }
   0xa   :  { %s51_s29 = sshll.u32 %s679_s3, 4  ;;  %s563_s30 = smov [#allocation2]   ;;  %s52_s29 = int_to_ptr.hbm [resolvable:$true] %s51_s29 }
   0xb   :  { %s28_s11 = sshll.u32 %s563_s30, 4  ;;  %s564_s5 = smov [#allocation7]   ;;  %s29_s11 = int_to_ptr.vmem [resolvable:$true] %s28_s11 }
   0xc   :  { %31 = dma.hbm_to_vmem [thread:$0]  %s27_s27, 128, %s29_s11, [#allocation3]  }
   0xd   :  { %s53_s12 = sshll.u32 %s564_s5, 4  ;;  %s81_s15 = sshll.u32 %s683_s7, 4  ;;  %s54_s12 = int_to_ptr.vmem [resolvable:$true] %s53_s12  ;;  %s82_s15 = int_to_ptr.hbm [resolvable:$true] %s81_s15 }
   0xe   :  { %59 = dma.hbm_to_vmem [thread:$0]  %s52_s29, 512, %s54_s12, [#allocation6], %s560_s21, %s560_s21, %s561_s22  }
   0xf   :  { %s565_s0 = smov [#allocation10]  }
  0x10   :  { %s83_s16 = sshll.u32 %s565_s0, 4  ;;  %s84_s16 = int_to_ptr.vmem [resolvable:$true] %s83_s16 }
  0x11   :  { %89 = dma.hbm_to_vmem [thread:$0]  %s82_s15, 512, %s84_s16, [#allocation9], %s560_s21, %s560_s21, %s561_s22  }
  0x12   :  { %549 = dma.done.wait [#allocation3], 128  }
  0x13   :  { %550 = vsyncadd [#allocation3], 4294967168 }
  0x14   :  { %551 = dma.done.wait [#allocation6], 768  }
  0x15   :  { %552 = vsyncadd [#allocation6], 4294966528 }
  0x16   :  { %553 = dma.done.wait [#allocation9], 1024  }
  0x17   :  { %554 = vsyncadd [#allocation9], 4294966272  ;;  %v114_v0 = vld [vmem:[#allocation5 + $0x8] sm:$0xff]  ;;  %v113_v1 = vld [vmem:[#allocation5] sm:$0xff]  ;;  %vm119_vm0 = vcmask 130048   ;;  %vm152_vm1 = vcmask 261120   ;;  %v240_v35 = vlaneseq }
  0x18   :  { %137 = vmatpush.msra.mxu0 %v114_v0  ;;  %v639_v2 = vld [vmem:[#allocation2] sm:$0xff]  ;;  %v147_v3 = vld [vmem:[#allocation7 + $0x18] sm:$0xff]  ;;  %v146_v4 = vld [vmem:[#allocation7 + $0x10] sm:$0xff]  ;;  %s324_s24 = sshll.u32 %s685_s9, 4  ;;  %s568_s25 = smov [#allocation12]   ;;  %s325_s24 = int_to_ptr.hbm [resolvable:$true] %s324_s24 }
  0x19   :  { %168 = vmatpush.msra.mxu1 %v147_v3  ;;  %v145_v5 = vld [vmem:[#allocation7 + $0x8] sm:$0xff]  ;;  %v144_v6 = vld [vmem:[#allocation7] sm:$0xff]  ;;  %v180_v7 = vld [vmem:[#allocation8 + $0x18] sm:$0xff]  ;;  %v241_v37 = vand.u32 127, %v240_v35  ;;  %s333_s26 = sshll.u32 %s568_s25, 4  ;;  %s335_s9 = sshll.u32 %s686_s10, 4  ;;  %s334_s26 = int_to_ptr.vmem [resolvable:$true] %s333_s26  ;;  %s336_s9 = int_to_ptr.hbm [resolvable:$true] %s335_s9 }
  0x1a   :  { %138 = vmatpush.msra.mxu0 %v113_v1  ;;  %200 = vmatpush.msra.mxu2 %v180_v7  ;;  %v369_v8 = vld [vmem:[%s678_s2] ss:$0 sm:$0xff]  ;;  %v179_v12 = vld [vmem:[#allocation8 + $0x10] sm:$0xff]  ;;  %v177_v14 = vld [vmem:[#allocation8] sm:$0xff] }
  0x1b   :  { %352 = vmatmul.msk.f32.vlgmr.msra.gmra.mxu0 %vm119_vm0, %v639_v2  ;;  %169 = vmatpush.msra.mxu1 %v146_v4  ;;  %v178_v13 = vld [vmem:[#allocation8 + $0x8] sm:$0xff]  ;;  %v212_v15 = vld [vmem:[#allocation10 + $0x18] sm:$0xff]  ;;  %v211_v20 = vld [vmem:[#allocation10 + $0x10] sm:$0xff]  ;;  %v246_v39 = vand.u32 1, %v241_v37  ;;  %vm312_vm8 = vcmp.eq.s32.totalorder %v241_v37, 0 }
  0x1c   :  { %201 = vmatpush.msra.mxu2 %v179_v12  ;;  %232 = vmatpush.msra.mxu3 %v212_v15  ;;  %v370_v16 = vld [vmem:[%s680_s4] ss:$0 sm:$0xff]  ;;  %v209_v22 = vld [vmem:[#allocation10] sm:$0xff] }
  0x1d   :  { %170 = vmatpush.msra.mxu1 %v145_v5  ;;  %v210_v21 = vld [vmem:[#allocation10 + $0x8] sm:$0xff]  ;;  %vm658_vm2 = vcmp.eq.s32.totalorder %v246_v39, 1 }
  0x1e   :  { %202 = vmatpush.msra.mxu2 %v178_v13  ;;  %233 = vmatpush.msra.mxu3 %v211_v20  ;;  %v371_v23 = vld [vmem:[%s682_s6] ss:$0 sm:$0xff]  ;;  %s566_s6 = smov 112  }
  0x1f   :  { %171 = vmatpush.msra.mxu1 %v144_v6  ;;  %v372_v27 = vld [vmem:[%s684_s8] ss:$0 sm:$0xff]  ;;  %s567_s8 = smov [#allocation11]  }
  0x20   :  { %203 = vmatpush.msra.mxu2 %v177_v14  ;;  %234 = vmatpush.msra.mxu3 %v210_v21  ;;  %s322_s21 = sshll.u32 %s567_s8, 4  ;;  %s323_s21 = int_to_ptr.vmem [resolvable:$true] %s322_s21 }
  0x22   :  { %235 = vmatpush.msra.mxu3 %v209_v22 }
  0x98   :  { %v140_v9 = vpop.f32.mrf.mxu0 }
  0x99   :  { %v141_v10 = vadd.f32 %v369_v8, %v140_v9  ;;  %v283_v8 = vshrl.u32 %v240_v35, 7 }
  0x9b   :  { %v143_v11 = vmax.f32 %v141_v10, 0.0  ;;  %vm311_vm7 = vcmp.eq.s32.totalorder %v283_v8, 0 }
  0x9c   :  { %vm313_vm9 = vmand %vm311_vm7, %vm312_vm8 }
  0x9d   :  { %353 = vmatmul.msk.f32.vlgmr.msra.gmra.mxu1 %vm152_vm1, %v143_v11 }
 0x11a   :  { %v173_v17 = vpop.f32.mrf.mxu1 }
 0x11b   :  { %v174_v18 = vadd.f32 %v370_v16, %v173_v17 }
 0x11d   :  { %v176_v19 = vmax.f32 %v174_v18, 0.0 }
 0x11f   :  { %354 = vmatmul.msk.f32.vlgmr.msra.gmra.mxu2 %vm152_vm1, %v176_v19 }
 0x1a2   :  { %v205_v24 = vpop.f32.mrf.mxu2 }
 0x1a3   :  { %v206_v25 = vadd.f32 %v371_v23, %v205_v24 }
 0x1a5   :  { %v208_v26 = vmax.f32 %v206_v25, 0.0 }
 0x1a7   :  { %355 = vmatmul.msk.f32.vlgmr.msra.gmra.mxu3 %vm152_vm1, %v208_v26 }
 0x22a   :  { %v237_v28 = vpop.f32.mrf.mxu3 }
 0x22b   :  { %v238_v29 = vadd.f32 %v372_v27, %v237_v28 }
 0x22d   :  { %v289_v30 = vsub.f32 0.0, %v238_v29  ;;  %v356_v47 = vmul.f32 -1.442695, %v238_v29 }
 0x22f   :  { %v291_v31 = vand.u32 2147483647, %v289_v30  ;;  %v290_v40 = vmax.f32 %v289_v30, 0.0 }
 0x231   :  { %v292_v32 = vsub.f32 0.0, %v291_v31 }
 0x233   :  { %v293_v33 = vmul.f32 1.442695, %v292_v32 }
 0x235   :  { %373 = vpow2.f32 %v293_v33 }
 0x23b   :  { %v374_v34 = vpop.eup %373 }
 0x23c   :  { %v295_v36 = vadd.f32 1.0, %v374_v34 }
 0x23e   :  { %375 = vlog2.f32 %v295_v36 }
 0x23f   :  { %377 = vpow2.f32 %v356_v47 }
 0x244   :  { %v376_v38 = vpop.eup %375 }
 0x245   :  { %v297_v41 = vmul.f32 0.6931472, %v376_v38  ;;  %v378_v48 = vpop.eup %377 }
 0x246   :  { %v258_v49 = vadd.f32 1.0, %v378_v48 }
 0x247   :  { %v298_v42 = vadd.f32 %v297_v41, %v290_v40 }
 0x248   :  { %379 = vrcp.f32 %v258_v49  ;;  %v270_v61 = vand.u32 2147483648, %v258_v49  ;;  %vm264_vm4 = vweird.f32 %v258_v49  ;;  %v268_v62 = vand.u32 2147483647, %v258_v49 }
 0x249   :  { %v299_v44 = vsub.f32 0.0, %v298_v42 }
 0x24a   :  { %v271_v1 = vor.u32 1.1754944e-38, %v270_v61  ;;  %vm269_vm6 = vcmp.eq.f32.partialorder %v268_v62, 8.507059e+37 }
 0x24b   :  { %v300_v45 = vsel %vm658_vm2, %v299_v44, 0.0 }
 0x24c   :  { %v301_v46 = vsel %vm119_vm0, %v300_v45, 0.0 }
 0x24d   :  { %302 = vadd.xlane.f32.xlu0 %v301_v46 }
 0x24e   :  { %v380_v50 = vpop.eup %379 }
 0x24f   :  { %v260_v51 = vmul.f32 %v380_v50, %v258_v49  ;;  %vm265_vm3 = vweird.f32 %v380_v50 }
 0x250   :  { %vm266_vm5 = vmor %vm264_vm4, %vm265_vm3 }
 0x251   :  { %v261_v53 = vsub.f32 1.0, %v260_v51 }
 0x253   :  { %v262_v56 = vmul.f32 %v380_v50, %v261_v53 }
 0x255   :  { %v263_v59 = vadd.f32 %v380_v50, %v262_v56 }
 0x257   :  { %v267_v0 = vsel %vm266_vm5, %v380_v50, %v263_v59 }
 0x258   :  { %v272_v3 = vsel %vm269_vm6, %v271_v1, %v267_v0 }
 0x259   :  { %v274_v4 = vmul.f32 %v272_v3, %v639_v2 }
 0x261   :  { %276 = vrot.lane.b32.xlu0 %v238_v29, %s566_s6 }
 0x2c0   :  { %v303_v52 = vpop.xlane.xlu0 %302 }
 0x2c1   :  { %v304_v54 = vrot.slane %v303_v52, 4 }
 0x2c3   :  { %v305_v55 = vadd.f32 %v304_v54, %v303_v52 }
 0x2c5   :  { %v306_v57 = vrot.slane %v305_v55, 2 }
 0x2c7   :  { %v307_v58 = vadd.f32 %v306_v57, %v305_v55 }
 0x2c9   :  { %v308_v60 = vrot.slane %v307_v58, 1 }
 0x2cb   :  { %v309_v63 = vadd.f32 %v308_v60, %v307_v58 }
 0x2cd   :  { %357 = vpush %v309_v63 }
 0x2d3   :  { %v277_v5 = vpop.permute.xlu0 %276 }
 0x2d4   :  { %v279_v6 = vadd.f32 %v277_v5, %v274_v4 }
 0x2d6   :  { %v280_v7 = vsel %vm658_vm2, %v279_v6, %v639_v2 }
 0x2d7   :  { %281 = vst.msk [vmem:[#allocation11] sm:$0xff] %vm119_vm0, %v280_v7 }
 0x2d8   :  { %327 = dma.vmem_to_hbm [thread:$0]  %s323_s21, 128, %s325_s24, [#allocation4]  }
 0x2fe   :  { %s358_s28 = spop %357 }
 0x2ff   :  { %v314_v9 = vstv %s358_s28 }
 0x300   :  { %v315_v10 = vsel %vm313_vm9, %v314_v9, 0.0 }
 0x301   :  { %316 = vst [vmem:[#allocation12] sm:$0xff] %v315_v10 }
 0x302   :  { %338 = dma.vmem_to_hbm [thread:$0]  %s334_s26, 128, %s336_s9, [#allocation13]  }
 0x303   :  { %555 = dma.done.wait [#allocation4], 128  }
 0x304   :  { %556 = vsyncadd [#allocation4], 4294967168 }
 0x305   :  { %557 = dma.done.wait [#allocation13], 128  }
 0x306   :  { %558 = vsyncadd [#allocation13], 4294967168 }
 0x307   :  { %347 = vsyncpa [#allocation3], 1 }
 0x308   :  { %348 = vsyncpa [#allocation6], 1 }
 0x309   :  { %349 = vsyncpa [#allocation9], 1 }
 0x30a   :  { %350 = vsyncpa [#allocation4], 1 }
 0x30b   :  { %351 = vsyncpa [#allocation13], 1 }

</bundles_post_ra>
